<compile_context>
chip_gen: v7x
topology: tpu7x:2x2x1
jax: 0.10.0
libtpu: 0.0.40
codegen_flags: <defaults>
</compile_context>

<pallas_src>
import functools
import math

import jax
import jax.numpy as jnp
from jax.experimental import pallas as pl
from jax.experimental.pallas import tpu as pltpu


# --------------------------------------------------------------------------
# Tiled linear: y = x @ W + b      (W stored as (d_in, d_out) == torch W.T)
# --------------------------------------------------------------------------
def _pick_tile(dim, target, align):
    """Largest block <= target that is align-multiple and divides dim, else full dim."""
    if dim <= target:
        return dim
    t = (target // align) * align
    while t >= align:
        if dim % t == 0:
            return t
        t -= align
    return dim  # no aligned divisor found; a full-dim block is always legal


def _linear_kernel(x_ref, w_ref, b_ref, o_ref, acc_ref):
    k = pl.program_id(2)

    @pl.when(k == 0)
    def _():
        # Bias folded into the accumulator init (saves a per-K-step VPU add).
        acc_ref[...] = jnp.broadcast_to(b_ref[...], acc_ref.shape)

    acc_ref[...] += jnp.dot(x_ref[...], w_ref[...],
                            preferred_element_type=jnp.float32)

    @pl.when(k == pl.num_programs(2) - 1)
    def _():
        o_ref[...] = acc_ref[...]


def pallas_linear(x, w, b, *, tm=256, tn=256, tk=512):
    m, kdim = x.shape
    kdim2, n = w.shape
    assert kdim == kdim2
    tm = _pick_tile(m, tm, 8)
    tn = _pick_tile(n, tn, 128)
    tk = _pick_tile(kdim, tk, 128)
    grid = (m // tm, n // tn, kdim // tk)
    cost = pl.CostEstimate(
        flops=2 * m * n * kdim,
        transcendentals=0,
        bytes_accessed=4 * (m * kdim + kdim * n + m * n + n),
    )
    return pl.pallas_call(
        _linear_kernel,
        out_shape=jax.ShapeDtypeStruct((m, n), jnp.float32),
        grid_spec=pltpu.PrefetchScalarGridSpec(
            num_scalar_prefetch=0,
            grid=grid,
            in_specs=[
                pl.BlockSpec((tm, tk), lambda i, j, k: (i, k)),
                pl.BlockSpec((tk, tn), lambda i, j, k: (k, j)),
                pl.BlockSpec((1, tn), lambda i, j, k: (0, j)),
            ],
            out_specs=pl.BlockSpec((tm, tn), lambda i, j, k: (i, j)),
            scratch_shapes=[pltpu.VMEM((tm, tn), jnp.float32)],
        ),
        compiler_params=pltpu.CompilerParams(
            dimension_semantics=("parallel", "parallel", "arbitrary"),
            vmem_limit_bytes=32 * 1024 * 1024,
        ),
        cost_estimate=cost,
    )(x, w, b)


# --------------------------------------------------------------------------
# Attention: one grid step per batch element, all heads handled inside.
# --------------------------------------------------------------------------
def _attention_tile(q, k, v, x_ref, attn_ref, *, nhead, scale):
    """q, k, v: (T, d_model) for one batch element (heads packed on lanes)."""
    t, d_model = q.shape
    d_k = d_model // nhead
    x_parts = []
    attn_sum = jnp.zeros((t, t), jnp.float32)
    # Static lane slices + unrolled head loop: every head's matmuls land in the
    # same grid step, sharing the loaded q/k/v tiles (no per-(b,h) grid overhead).
    for h in range(nhead):
        sl = slice(h * d_k, (h + 1) * d_k)
        qh = q[:, sl] * scale                       # pre-scale q: O(T*d_k), not O(T^2)
        s = jnp.dot(qh, k[:, sl].T, preferred_element_type=jnp.float32)
        s = s - jnp.max(s, axis=-1, keepdims=True)
        p = jnp.exp(s)
        p = p * pl.reciprocal(jnp.sum(p, axis=-1, keepdims=True), approx=True)
        # TODO(synk): nn.Dropout(p=0.1) on p_attn is identity here (eval mode).
        x_parts.append(jnp.dot(p, v[:, sl], preferred_element_type=jnp.float32))
        attn_sum = attn_sum + p
    x_ref[0] = jnp.concatenate(x_parts, axis=-1)    # single lane-dense (T, D) store
    attn_ref[0] = attn_sum * (1.0 / nhead)          # mean over heads applied once


def _attention_kernel_packed(qkv_ref, x_ref, attn_ref, *, nhead, d_model, scale):
    q = qkv_ref[0, :, 0 * d_model:1 * d_model]
    k = qkv_ref[0, :, 1 * d_model:2 * d_model]
    v = qkv_ref[0, :, 2 * d_model:3 * d_model]
    _attention_tile(q, k, v, x_ref, attn_ref, nhead=nhead, scale=scale)


def _attention_kernel_split(q_ref, k_ref, v_ref, x_ref, attn_ref, *, nhead, scale):
    _attention_tile(q_ref[0], k_ref[0], v_ref[0], x_ref, attn_ref,
                    nhead=nhead, scale=scale)


def _attention_call(kernel, inputs, in_specs, b, t, d_model, nhead):
    cost = pl.CostEstimate(
        flops=4 * b * t * t * d_model,
        transcendentals=b * nhead * t * t,
        bytes_accessed=4 * (4 * b * t * d_model + b * t * t),
    )
    # TODO(synk): for long sequences, tile T with an online-softmax (flash) loop;
    # this version keeps the full (T, T) scores per batch element in VMEM.
    return pl.pallas_call(
        kernel,
        out_shape=(
            jax.ShapeDtypeStruct((b, t, d_model), jnp.float32),
            jax.ShapeDtypeStruct((b, t, t), jnp.float32),
        ),
        grid=(b,),
        in_specs=in_specs,
        out_specs=(
            pl.BlockSpec((1, t, d_model), lambda i: (i, 0, 0)),
            pl.BlockSpec((1, t, t), lambda i: (i, 0, 0)),
        ),
        compiler_params=pltpu.CompilerParams(
            dimension_semantics=("parallel",),
            vmem_limit_bytes=32 * 1024 * 1024,
        ),
        cost_estimate=cost,
    )(*inputs)


def pallas_attention_packed(qkv, nhead):
    # qkv: (B, T, 3*d_model), batch-major, q/k/v packed on the lane axis.
    b, t, three_d = qkv.shape
    d_model = three_d // 3
    scale = 1.0 / math.sqrt(d_model // nhead)
    kern = functools.partial(_attention_kernel_packed,
                             nhead=nhead, d_model=d_model, scale=scale)
    in_specs = [pl.BlockSpec((1, t, three_d), lambda i: (i, 0, 0))]
    return _attention_call(kern, (qkv,), in_specs, b, t, d_model, nhead)


def pallas_attention_split(q, k, v, nhead):
    # q, k, v: (B, T, d_model) each.
    b, t, d_model = q.shape
    scale = 1.0 / math.sqrt(d_model // nhead)
    kern = functools.partial(_attention_kernel_split, nhead=nhead, scale=scale)
    spec = pl.BlockSpec((1, t, d_model), lambda i: (i, 0, 0))
    return _attention_call(kern, (q, k, v), [spec, spec, spec], b, t, d_model, nhead)


# --------------------------------------------------------------------------
# Module wrapper
# --------------------------------------------------------------------------
class MultiHeadedAttentionPallas:
    """Pallas port of BPGT.MultiHeadedAttention (forward, eval mode)."""

    def __init__(self, d_model, nhead, key, dropout=0.1):
        assert d_model % nhead == 0
        self.d_model = d_model
        self.nhead = nhead
        self.d_k = d_model // nhead
        bound = 1.0 / math.sqrt(d_model)
        keys = jax.random.split(key, 8)
        ws, bs = [], []
        for i in range(4):
            ws.append(jax.random.uniform(keys[2 * i], (d_model, d_model),
                                         jnp.float32, minval=-bound, maxval=bound))
            bs.append(jax.random.uniform(keys[2 * i + 1], (1, d_model),
                                         jnp.float32, minval=-bound, maxval=bound))
        self.w_q, self.w_k, self.w_v, self.w_o = ws
        self.b_q, self.b_k, self.b_v, self.b_o = bs
        # Fused QKV weight/bias for the self-attention path (single matmul).
        self.w_qkv = jnp.concatenate([self.w_q, self.w_k, self.w_v], axis=1)
        self.b_qkv = jnp.concatenate([self.b_q, self.b_k, self.b_v], axis=1)

    def __call__(self, query, key, value, mask=None):
        # query/key/value: (tokens, batch, d_model).
        # TODO(synk): additive mask-list support not implemented (mask=None path only).
        t, b, d = query.shape
        h = self.nhead

        def to_rows(x):  # (T, B, D) -> (B*T, D), batch-major rows (free reshape after one transpose)
            return jnp.transpose(x, (1, 0, 2)).reshape(b * t, d)

        if (query is key) and (key is value):
            # Self-attention: fused QKV projection, activation read from HBM once.
            qkv = pallas_linear(to_rows(query), self.w_qkv, self.b_qkv)
            x, attn = pallas_attention_packed(qkv.reshape(b, t, 3 * d), h)
        else:
            q = pallas_linear(to_rows(query), self.w_q, self.b_q).reshape(b, t, d)
            k = pallas_linear(to_rows(key), self.w_k, self.b_k).reshape(b, t, d)
            v = pallas_linear(to_rows(value), self.w_v, self.b_v).reshape(b, t, d)
            x, attn = pallas_attention_split(q, k, v, h)

        out = pallas_linear(x.reshape(b * t, d), self.w_o, self.b_o)
        out = jnp.transpose(out.reshape(b, t, d), (1, 0, 2))   # back to (T, B, D)
        return out, attn


# --------------------------------------------------------------------------
# Pure-JAX reference (mirrors the PyTorch module) for correctness checking
# --------------------------------------------------------------------------
def reference_forward(mod, query, key, value):
    t, b, d = query.shape
    h, d_k = mod.nhead, mod.d_k

    def lin(x, w, bias):
        return x.reshape(t * b, d) @ w + bias

    q = lin(query, mod.w_q, mod.b_q).reshape(t, b, h, d_k).transpose(1, 2, 0, 3)
    k = lin(key, mod.w_k, mod.b_k).reshape(t, b, h, d_k).transpose(1, 2, 0, 3)
    v = lin(value, mod.w_v, mod.b_v).reshape(t, b, h, d_k).transpose(1, 2, 0, 3)
    s = jnp.einsum("bhtd,bhsd->bhts", q, k) / math.sqrt(d_k)
    p = jax.nn.softmax(s, axis=-1)
    x = jnp.einsum("bhts,bhsd->bhtd", p, v).transpose(2, 0, 1, 3).reshape(t * b, d)
    out = (x @ mod.w_o + mod.b_o).reshape(t, b, d)
    return out, p.mean(axis=1)


if __name__ == "__main__":
    T, B, D, H = 8, 2, 128, 8   # tokens, batch, d_model, nhead  (d_k = 16)
    root = jax.random.PRNGKey(0)
    k_param, kq, kk, kv = jax.random.split(root, 4)

    mha = MultiHeadedAttentionPallas(D, H, k_param)

    # 1) Self-attention (fused QKV path).
    x_in = jax.random.normal(kq, (T, B, D), jnp.float32)
    out_sa, attn_sa = mha(x_in, x_in, x_in)
    jax.block_until_ready((out_sa, attn_sa))
    ref_out, ref_attn = reference_forward(mha, x_in, x_in, x_in)
    assert out_sa.shape == (T, B, D) and attn_sa.shape == (B, T, T)
    assert jnp.allclose(out_sa, ref_out, rtol=2e-3, atol=2e-3)
    assert jnp.allclose(attn_sa, ref_attn, rtol=2e-3, atol=2e-3)

    # 2) Distinct query / key / value (separate-projection path).
    q_in = jax.random.normal(kq, (T, B, D), jnp.float32)
    k_in = jax.random.normal(kk, (T, B, D), jnp.float32)
    v_in = jax.random.normal(kv, (T, B, D), jnp.float32)
    out_x, attn_x = mha(q_in, k_in, v_in)
    jax.block_until_ready((out_x, attn_x))
    ref_out_x, ref_attn_x = reference_forward(mha, q_in, k_in, v_in)
    assert jnp.allclose(out_x, ref_out_x, rtol=2e-3, atol=2e-3)
    assert jnp.allclose(attn_x, ref_attn_x, rtol=2e-3, atol=2e-3)

    print("KERNEL_OK")
</pallas_src>

<mosaic_0001>
module attributes {stable_mosaic.version = 11 : i64} {
  func.func @_linear_kernel(%arg0: i32, %arg1: i32, %arg2: i32, %arg3: memref<16x128xf32, #tpu.memory_space<vmem>>, %arg4: memref<128x128xf32, #tpu.memory_space<vmem>>, %arg5: memref<1x128xf32, #tpu.memory_space<vmem>>, %arg6: memref<16x128xf32, #tpu.memory_space<vmem>>, %arg7: memref<16x128xf32, #tpu.memory_space<vmem>>) attributes {dimension_semantics = [#tpu.dimension_semantics<parallel>, #tpu.dimension_semantics<parallel>, #tpu.dimension_semantics<arbitrary>], iteration_bounds = array<i64: 1, 3, 1>, scalar_prefetch = 0 : i64, scratch_operands = 1 : i64, tpu.core_type = #tpu.core_type<tc>, window_params = [{transform_indices = @transform_0, window_bounds = array<i64: 16, 128>}, {transform_indices = @transform_1, window_bounds = array<i64: 128, 128>}, {transform_indices = @transform_2, window_bounds = array<i64: 1, 128>}, {transform_indices = @transform_3, window_bounds = array<i64: 16, 128>}]} {
    %c0_i32 = arith.constant 0 : i32
    %0 = arith.cmpi eq, %arg2, %c0_i32 : i32
    %1 = arith.extui %0 : i1 to i32
    %c0_i32_0 = arith.constant 0 : i32
    %2 = arith.cmpi ne, %1, %c0_i32_0 : i32
    scf.if %2 {
      %c0_10 = arith.constant 0 : index
      %c0_11 = arith.constant 0 : index
      %12 = vector.load %arg5[%c0_10, %c0_11] : memref<1x128xf32, #tpu.memory_space<vmem>>, vector<1x128xf32>
      %13 = vector.shape_cast %12 : vector<1x128xf32> to vector<1x128xf32>
      %14 = vector.broadcast %13 : vector<1x128xf32> to vector<16x128xf32>
      %c0_12 = arith.constant 0 : index
      %c0_13 = arith.constant 0 : index
      %15 = vector.load %arg7[%c0_12, %c0_13] : memref<16x128xf32, #tpu.memory_space<vmem>>, vector<16x128xf32>
      tpu.vector_store %arg7[%c0_12, %c0_13], %14 {strides = array<i32>} : memref<16x128xf32, #tpu.memory_space<vmem>>, vector<16x128xf32>,
    } else {
    }
    %c0 = arith.constant 0 : index
    %c0_1 = arith.constant 0 : index
    %3 = vector.load %arg7[%c0, %c0_1] : memref<16x128xf32, #tpu.memory_space<vmem>>, vector<16x128xf32>
    %c0_2 = arith.constant 0 : index
    %c0_3 = arith.constant 0 : index
    %4 = vector.load %arg3[%c0_2, %c0_3] : memref<16x128xf32, #tpu.memory_space<vmem>>, vector<16x128xf32>
    %c0_4 = arith.constant 0 : index
    %c0_5 = arith.constant 0 : index
    %5 = vector.load %arg4[%c0_4, %c0_5] : memref<128x128xf32, #tpu.memory_space<vmem>>, vector<128x128xf32>
    %cst = arith.constant dense<0.000000e+00> : vector<16x128xf32>
    %6 = tpu.matmul %4, %5, %cst {dimension_numbers = #tpu.dot_dimension_numbers<[1], [0], [0], [1], [0, 0, 1, 1], [], []>} : vector<16x128xf32>, vector<128x128xf32>, vector<16x128xf32> -> vector<16x128xf32>
    %7 = arith.addf %3, %6 : vector<16x128xf32>
    %c0_6 = arith.constant 0 : index
    %c0_7 = arith.constant 0 : index
    %8 = vector.load %arg7[%c0_6, %c0_7] : memref<16x128xf32, #tpu.memory_space<vmem>>, vector<16x128xf32>
    tpu.vector_store %arg7[%c0_6, %c0_7], %7 {strides = array<i32>} : memref<16x128xf32, #tpu.memory_space<vmem>>, vector<16x128xf32>,
    %c0_i32_8 = arith.constant 0 : i32
    %9 = arith.cmpi eq, %arg2, %c0_i32_8 : i32
    %10 = arith.extui %9 : i1 to i32
    %c0_i32_9 = arith.constant 0 : i32
    %11 = arith.cmpi ne, %10, %c0_i32_9 : i32
    scf.if %11 {
      %c0_10 = arith.constant 0 : index
      %c0_11 = arith.constant 0 : index
      %12 = vector.load %arg7[%c0_10, %c0_11] : memref<16x128xf32, #tpu.memory_space<vmem>>, vector<16x128xf32>
      %c0_12 = arith.constant 0 : index
      %c0_13 = arith.constant 0 : index
      %13 = vector.load %arg6[%c0_12, %c0_13] : memref<16x128xf32, #tpu.memory_space<vmem>>, vector<16x128xf32>
      tpu.vector_store %arg6[%c0_12, %c0_13], %12 {strides = array<i32>} : memref<16x128xf32, #tpu.memory_space<vmem>>, vector<16x128xf32>,
    } else {
    }
    return
  }
  func.func @transform_0(%arg0: i32, %arg1: i32, %arg2: i32) -> (i32, i32) {
    %c0_i32 = arith.constant 0 : i32
    return %arg0, %arg2 : i32, i32
  }
  func.func @transform_1(%arg0: i32, %arg1: i32, %arg2: i32) -> (i32, i32) {
    %c0_i32 = arith.constant 0 : i32
    return %arg2, %arg1 : i32, i32
  }
  func.func @transform_2(%arg0: i32, %arg1: i32, %arg2: i32) -> (i32, i32) {
    %c0_i32 = arith.constant 0 : i32
    %c0_i32_0 = arith.constant 0 : i32
    return %c0_i32, %arg1 : i32, i32
  }
  func.func @transform_3(%arg0: i32, %arg1: i32, %arg2: i32) -> (i32, i32) {
    %c0_i32 = arith.constant 0 : i32
    return %arg0, %arg1 : i32, i32
  }
}

</mosaic_0001>

<bundles_post_ra>
// kernel: tpu_custom_call.1
= control target key start
LH: loop header
LB: loop body
LE: loop exit
PB: predicated region body
PF: predicated region fallthrough
CT: control target
= control target key end

     0   :  { %8 = vsyncpa [#allocation4], 0  ;;  %s1100_s0 = inlined_call_operand.hbm [shape: f32[16,128], index: 0, kind: input, shape index: {}]   ;;  %s1101_s1 = inlined_call_operand.hbm [shape: f32[128,384], index: 1, kind: input, shape index: {}]   ;;  %s1102_s2 = inlined_call_operand.vmem [shape: f32[1,384], index: 2, kind: input, shape index: {}]   ;;  %s1103_s3 = inlined_call_operand.hbm [shape: f32[16,384], index: 3, kind: output, shape index: {}]  }
   0x1   :  { %9 = vsyncpa [#allocation7], 0 }
   0x2   :  { %11 = vsyncpa [#allocation7 + $0x1], 0 }
   0x3   :  { %12 = vsyncpa [#allocation5], 0 }
   0x4   :  { %14 = vsyncpa [#allocation5 + $0x1], 0  ;;  %s860_s12 = smov 0   ;;  %s862_s13 = smov 0  }
   0x5   :  { %s864_s14 = smov 0   ;;  %s866_s15 = smov 0  }
   0x6   :  { %s868_s16 = smov 0   ;;  %s870_s17 = smov 0  }
   0x7 LB: > { %s505_s18 = sadd.s32 4294967295, %s829_s17   ;;  %s506_s19 = sadd.s32 4294967294, %s829_s17   ;;  %s829_s17 = sphi %s870_s17, %s20_s17   ;;  %s825_s16 = sphi %s868_s16, %s1130_s16   ;;  %s821_s15 = sphi %s866_s15, %s1129_s15   ;;  %s817_s14 = sphi %s864_s14, %s1128_s14   ;;  %s813_s13 = sphi %s862_s13, %s1127_s13   ;;  %s809_s12 = sphi %s860_s12, %s1126_s12  }
   0x8   : > { %p83_p0 = scmp.ne.s32.totalorder %s817_s14, %s813_s13  ;;  %p84_p1 = scmp.eq.s32.totalorder %s829_s17, 0 }
   0x9   : > { %p89_p2 = scmp.ne.s32.totalorder %s813_s13, %s809_s12  ;;  %p897_p3 = scmp.eq.s32.totalorder %s505_s18, 0 }
   0xa   : > { %p901_p4 = por %p84_p1, %p83_p0  ;;  %p141_p5 = scmp.eq.s32.totalorder %s505_s18, 2 }
   0xb   : > { %s1111_s20 = scalar_select %p897_p3, 1, 0 }
   0xc   : > { %p907_p6 = por %p897_p3, %p89_p2  ;;  %p147_p7 = scmp.eq.s32.totalorder %s506_s19, 2 }
   0xd   : > { %p911_p8 = por %p141_p5, %p83_p0  ;;  %p507_p9 = scmp.ge.s32.totalorder %s829_s17, 1 }
   0xe   : > { %s1113_s22 = scalar_select %p907_p6, 1, 0 }
   0xf   : > { %s1114_s23 = scalar_select %p911_p8, 1, 0 }
  0x10   : > { %p916_p10 = por %p147_p7, %p89_p2  ;;  %p154_p11 = scmp.lt.s32.totalorder %s829_s17, 4 }
  0x11   : > { %s831_s26 = smov [#allocation3]   ;;  %p627_p0 = scmp.lt.s32.totalorder %s829_s17, 3 }
  0x12   : > { %s1115_s24 = scalar_select %p916_p10, 1, 0 }
  0x13   : > { %p921_p12 = pnand %p507_p9, %p154_p11  ;;  %s170_s27 = sshll.u32 %s831_s26, 4  ;;  %s171_s27 = int_to_ptr.vmem [resolvable:$true] %s170_s27 }
  0x14   : > { %p936_p2 = pnand %p627_p0, %p901_p4  ;;  %s35_s30 = sadd.s32 1, %s825_s16 }
  0x15   : > { %s1116_s25 = scalar_select %p921_p12, 1, 0 }
  0x16   : > { %p614_p13 = pneg %p921_p12  ;;  %s685_s6 = scalar_lea.hbm %s1100_s0, 256 }
  0x17   : > { %s1118_s29 = scalar_select %p936_p2, 1, 0 }
  0x18   : > { %p930_p1 = pnand %p614_p13, %p897_p3  ;;  %p686_p5 = scmp.ne.s32.totalorder %s1100_s0, %s685_s6 }
  0x19   : > { %p692_p4 = scmp.lt.u32.totalorder %s685_s6, %s1100_s0 }
  0x1a   : > { %p687_p7 = pneg %p930_p1 }
  0x1c   : > { %p688_p9 = pnand %p687_p7, %p686_p5 }
  0x1e   : > { %p689_p11 = pneg %p688_p9 }
  0x20   : > { %p694_p13 = pnand %p692_p4, %p689_p11 }
  0x22   : > { %697 = shalt.err (!%p694_p13)
}
  0x23   : > { %s698_s11 = scalar_lea.vmem %s171_s27, 256  ;;  %p706_p6 = scmp.lt.s32.totalorder %s171_s27, %s171_s27 }
  0x24   : > { %p699_p0 = scmp.ne.s32.totalorder %s171_s27, %s698_s11  ;;  %p707_p3 = scmp.lt.s32.totalorder %s698_s11, %s698_s11 }
  0x26   : > { %p701_p10 = pnand %p699_p0, %p687_p7  ;;  %p708_p12 = por %p707_p3, %p706_p6 }
  0x28   : > { %p702_p8 = pneg %p701_p10 }
  0x2a   : > { %p709_p2 = pnand %p708_p12, %p702_p8 }
  0x2c   : > { %712 = shalt.err (!%p709_p2)
}
  0x2d   : > { %s1110_s18 = smov 128   ;;  %s833_s19 = smov 8  }
  0x2e   : > { %617 = dma.hbm_to_vmem [thread:$0]  (!%p930_p1), %s1100_s0, 256, %s171_s27, [#allocation4], %s1110_s18, %s1110_s18, %s833_s19  }
  0x2f   : > { %p37_p10 = scmp.ge.s32.totalorder %s35_s30, 3  ;;  %s76_s4 = sadd.s32 1, %s817_s14 }
  0x30   : > { %s184_s5 = sand.u32 1, %s817_s14   ;;  %s511_s8 = sshll.u32 %s825_s16, 7 }
  0x31   : > { %s1132_s30 = smov (%p37_p10, %s35_s30), 0  ;;  %s510_s6 = sshll.u32 %s184_s5, 7 }
  0x32   : > { %s72_s7 = ssub.s32 %s825_s16, %s1132_s30  ;;  %s970_s10 = scalar_lea.hbm %s1101_s1, %s511_s8 }
  0x33   : > { %p74_p3 = scmp.eq.s32.totalorder %s72_s7, 0  ;;  %s188_s27 = scalar_lea.vmem [#allocation6], %s510_s6 }
  0x34   : > { %s197_s11 = sshll.u32 %s188_s27, 4  ;;  %s977_s26 = scalar_lea.sflag [#allocation7], %s184_s5  ;;  %s975_s11 = int_to_ptr.vmem [resolvable:$true] %s197_s11 }
  0x35   : > { %s973_s21 = scalar_select %p74_p3, %s817_s14, %s76_s4  }
  0x36   : > { %s713_s18 = scalar_lea.hbm %s970_s10, 2048  ;;  %p1119_p8 = scmp.ne.s32.totalorder %s1118_s29, 0 }
  0x37   : > { %p714_p6 = scmp.ne.s32.totalorder %s970_s10, %s713_s18  ;;  %s718_s28 = scalar_lea.hbm %s1101_s1, 6144 }
  0x38   : > { %p715_p12 = pneg %p1119_p8  ;;  %p719_p5 = scmp.lt.u32.totalorder %s970_s10, %s1101_s1 }
  0x39   : > { %p720_p7 = scmp.lt.u32.totalorder %s718_s28, %s713_s18  ;;  %p722_p11 = scmp.lt.u32.totalorder %s713_s18, %s970_s10 }
  0x3a   : > { %p716_p1 = pnand %p715_p12, %p714_p6 }
  0x3b   : > { %p721_p9 = por %p720_p7, %p719_p5 }
  0x3c   : > { %p717_p2 = pneg %p716_p1 }
  0x3d   : > { %p723_p4 = por %p722_p11, %p721_p9 }
  0x3f   : > { %p724_p13 = pnand %p723_p4, %p717_p2 }
  0x41   : > { %727 = shalt.err (!%p724_p13)
}
  0x42   : > { %s728_s4 = scalar_lea.vmem %s975_s11, 2048  ;;  %s834_s5 = smov [#allocation6]  }
  0x43   : > { %p729_p0 = scmp.ne.s32.totalorder %s975_s11, %s728_s4  ;;  %s733_s27 = sshll.u32 %s834_s5, 4  ;;  %s734_s27 = int_to_ptr.vmem [resolvable:$false] %s733_s27 }
  0x44   : > { %s735_s7 = scalar_lea.vmem %s734_s27, 4096  ;;  %p736_p6 = scmp.lt.s32.totalorder %s975_s11, %s734_s27 }
  0x45   : > { %p731_p10 = pnand %p729_p0, %p715_p12  ;;  %p737_p1 = scmp.lt.s32.totalorder %s735_s7, %s728_s4 }
  0x47   : > { %p732_p3 = pneg %p731_p10  ;;  %p738_p5 = por %p737_p1, %p736_p6 }
  0x49   : > { %p739_p7 = pnand %p738_p5, %p732_p3 }
  0x4b   : > { %742 = shalt.err (!%p739_p7)
}
  0x4c   : > { %s835_s18 = smov 384   ;;  %s1120_s8 = smov 128  }
  0x4d   : > { %621 = dma.hbm_to_vmem [thread:$0]  (!%p1119_p8), %s970_s10, 2048, %s975_s11, %s977_s26, %s835_s18, %s1120_s8, %s833_s19  }
  0x4e   : > { %p1121_p12 = scmp.ne.s32.totalorder %s1116_s25, 0 }
  0x4f   : > { %p1122_p2 = scmp.ne.s32.totalorder (!%p1121_p12), %s1111_s20, 0 }
  0x50   : > { %215 = sbr.rel (%p1121_p12) target bundleno = 358 (0x166), region = 32 }
  0x57   : > { %796 = dma.done.wait (%p1122_p2), [#allocation4], 256  }
  0x58   : > { %798 = vsyncadd (%p1122_p2), [#allocation4], 4294967040  ;;  %s1014_s28 = sand.u32 1, %s813_s13   ;;  %p1123_p8 = scmp.ne.s32.totalorder %s1113_s22, 0 }
  0x59   : > { %s514_s29 = sshll.u32 %s1014_s28, 7  ;;  %s222_s6 = scalar_lea.sflag [#allocation7], %s1014_s28 }
  0x5a   : > { %s1018_s9 = scalar_lea.vmem [#allocation6], %s514_s29 }
  0x5b   : > { %800 = dma.done.wait (%p1123_p8), %s222_s6, 2048  }
  0x5c   : > { %802 = vsyncadd (%p1123_p8), %s222_s6, 4294965248  ;;  %v274_v0 = vld [vmem:[%s1018_s9] sm:$0xff]  ;;  %v275_v1 = vld [vmem:[%s1018_s9 + $0x8] sm:$0xff]  ;;  %p253_p9 = scmp.lt.s32.totalorder %s821_s15, 2  ;;  %s515_s20 = sshll.u32 %s1014_s28, 4 }
  0x5d   : > { %v276_v2 = vld [vmem:[%s1018_s9 + $0x10] sm:$0xff]  ;;  %v574_v3 = vpack.c.bf16 %v275_v1, %v274_v0  ;;  %v277_v4 = vld [vmem:[%s1018_s9 + $0x18] sm:$0xff]  ;;  %v278_v6 = vld [vmem:[%s1018_s9 + $0x20] sm:$0xff]  ;;  %s250_s11 = scalar_lea.vmem [#allocation8], %s515_s20  ;;  %s518_s4 = sshll.u32 %s821_s15, 7 }
  0x5e   : > { %v578_v5 = vpack.c.bf16 %v277_v4, %v276_v2  ;;  %v279_v7 = vld [vmem:[%s1018_s9 + $0x28] sm:$0xff]  ;;  %v272_v9 = vld [vmem:[#allocation3] sm:$0xff]  ;;  %v281_v11 = vld [vmem:[%s1018_s9 + $0x38] sm:$0xff]  ;;  %s254_s22 = scalar_select %p253_p9, %s821_s15, 2 }
  0x5f   : > { %575 = vmatprep.subr.bf16.mxu0 %v574_v3  ;;  %v582_v8 = vpack.c.bf16 %v279_v7, %v278_v6  ;;  %v280_v10 = vld [vmem:[%s1018_s9 + $0x30] sm:$0xff]  ;;  %571 = vmatprep.mubr.f32.mxu0 %v272_v9  ;;  %v282_v13 = vld [vmem:[%s1018_s9 + $0x40] sm:$0xff]  ;;  %v283_v14 = vld [vmem:[%s1018_s9 + $0x48] sm:$0xff]  ;;  %s392_s26 = sshll.u32 %s250_s11, 4  ;;  %s1052_s7 = scalar_lea.hbm %s1103_s3, %s518_s4  ;;  %s1047_s26 = int_to_ptr.vmem [resolvable:$true] %s392_s26 }
  0x60   : > { %577 = vmatpush3.bf16.msra.mxu0 %v574_v3  ;;  %v586_v12 = vpack.c.bf16 %v281_v11, %v280_v10  ;;  %v590_v15 = vpack.c.bf16 %v283_v14, %v282_v13  ;;  %v284_v16 = vld [vmem:[%s1018_s9 + $0x50] sm:$0xff]  ;;  %v285_v17 = vld [vmem:[%s1018_s9 + $0x58] sm:$0xff]  ;;  %v286_v19 = vld [vmem:[%s1018_s9 + $0x60] sm:$0xff]  ;;  %s255_s10 = scalar_lea.vmem %s1102_s2, %s254_s22  ;;  %s377_s18 = scalar_lea.sflag [#allocation5], %s1014_s28 }
  0x61   : > { %579 = vmatprep.subr.bf16.mxu0 %v578_v5  ;;  %v594_v18 = vpack.c.bf16 %v285_v17, %v284_v16  ;;  %v287_v20 = vld [vmem:[%s1018_s9 + $0x68] sm:$0xff]  ;;  %v288_v22 = vld [vmem:[%s1018_s9 + $0x70] sm:$0xff]  ;;  %v289_v23 = vld [vmem:[%s1018_s9 + $0x78] sm:$0xff]  ;;  %s743_s8 = scalar_lea.vmem %s1047_s26, 256  ;;  %p1124_p4 = scmp.ne.s32.totalorder %s1114_s23, 0 }
  0x62   : > { %v598_v21 = vpack.c.bf16 %v287_v20, %v286_v19  ;;  %v602_v24 = vpack.c.bf16 %v289_v23, %v288_v22  ;;  %v273_v25 = vld [vmem:[#allocation3 + $0x8] sm:$0xff]  ;;  %v516_v26 = vld [vmem:[%s255_s10] ss:$0 sm:$0xff]  ;;  %p744_p11 = scmp.ne.s32.totalorder %s1047_s26, %s743_s8  ;;  %s836_s15 = smov [#allocation8]  }
  0x63   : > { %s747_s29 = sshll.u32 %s836_s15, 4  ;;  %s748_s29 = int_to_ptr.vmem [resolvable:$false] %s747_s29 }
  0x64   : > { %581 = vmatpush3.bf16.msra.mxu0 %v578_v5  ;;  %p745_p13 = pnand %p744_p11, %p1124_p4  ;;  %s749_s6 = scalar_lea.vmem %s748_s29, 512 }
  0x65   : > { %583 = vmatprep.subr.bf16.mxu0 %v582_v8  ;;  %p750_p10 = scmp.lt.s32.totalorder %s1047_s26, %s748_s29  ;;  %p751_p3 = scmp.lt.s32.totalorder %s749_s6, %s743_s8 }
  0x66   : > { %p746_p0 = pneg %p745_p13 }
  0x67   : > { %p752_p6 = por %p751_p3, %p750_p10 }
  0x68   : > { %585 = vmatpush3.bf16.msra.mxu0 %v582_v8 }
  0x69   : > { %587 = vmatprep.subr.bf16.mxu0 %v586_v12  ;;  %p753_p1 = pnand %p752_p6, %p746_p0 }
  0x6c   : > { %589 = vmatpush3.bf16.msra.mxu0 %v586_v12 }
  0x6d   : > { %591 = vmatprep.subr.bf16.mxu0 %v590_v15 }
  0x70   : > { %593 = vmatpush3.bf16.msra.mxu0 %v590_v15 }
  0x71   : > { %595 = vmatprep.subr.bf16.mxu0 %v594_v18 }
  0x74   : > { %597 = vmatpush3.bf16.msra.mxu0 %v594_v18 }
  0x75   : > { %599 = vmatprep.subr.bf16.mxu0 %v598_v21 }
  0x78   : > { %601 = vmatpush3.bf16.msra.mxu0 %v598_v21 }
  0x79   : > { %603 = vmatprep.subr.bf16.mxu0 %v602_v24 }
  0x7c   : > { %605 = vmatpush3.bf16.msra.mxu0 %v602_v24 }
  0x7f   : > { %572 = vmatmul.mubr.f32.vlgmr.msra.gmra.mrb[0].mxu0 %v273_v25 }
 0x152   : > { %v573_v27 = vpop.f32.mrb[0].mxu0 }
 0x153   : > { %v366_v28 = vadd.f32 %v573_v27, %v516_v26  ;;  %v356_v29 = vpop.f32.mrb[1].mxu0 }
 0x154   : > { %v365_v30 = vadd.f32 %v516_v26, %v356_v29 }
 0x155   : > { %375 = vst [vmem:[%s250_s11 + $0x8] sm:$0xff] %v366_v28 }
 0x156   : > { %374 = vst [vmem:[%s250_s11] sm:$0xff] %v365_v30 }
 0x157   : > { %756 = shalt.err (!%p753_p1)
}
 0x158   : > { %s757_s9 = scalar_lea.hbm %s1052_s7, 256  ;;  %s761_s25 = scalar_lea.hbm %s1103_s3, 768 }
 0x159   : > { %p758_p5 = scmp.ne.s32.totalorder %s1052_s7, %s757_s9  ;;  %p762_p2 = scmp.lt.u32.totalorder %s1052_s7, %s1103_s3 }
 0x15a   : > { %p763_p8 = scmp.lt.u32.totalorder %s761_s25, %s757_s9  ;;  %p765_p11 = scmp.lt.u32.totalorder %s757_s9, %s1052_s7 }
 0x15b   : > { %p759_p7 = pnand %p758_p5, %p1124_p4 }
 0x15c   : > { %p764_p9 = por %p763_p8, %p762_p2 }
 0x15d   : > { %p760_p12 = pneg %p759_p7 }
 0x15e   : > { %p766_p13 = por %p765_p11, %p764_p9 }
 0x160   : > { %p767_p0 = pnand %p766_p13, %p760_p12 }
 0x162   : > { %770 = shalt.err (!%p767_p0)
}
 0x163   : > { %s837_s11 = smov 128   ;;  %s838_s4 = smov 384  }
 0x164   : > { %s839_s5 = smov 8  }
 0x165   : > { %612 = dma.vmem_to_hbm [thread:$0]  (%p1124_p4), %s1047_s26, 256, %s1052_s7, %s377_s18, %s837_s11, %s838_s4, %s839_s5  }
 0x166 PF: > { %p629_p10 = scmp.ge.s32.totalorder %s829_s17, 2  ;;  %s407_s27 = sand.u32 1, %s809_s12  }
 0x167   : > { %p1125_p3 = scmp.ne.s32.totalorder %s1115_s24, 0  ;;  %s408_s8 = scalar_lea.sflag [#allocation5], %s407_s27 }
 0x169   : > { %p623_p6 = pnand %p629_p10, %p1125_p3 }
 0x16b   : > { %804 = dma.done.wait (!%p623_p6), %s408_s8, 256  }
 0x16c   : > { %806 = vsyncadd (!%p623_p6), %s408_s8, 4294967040  ;;  %s20_s17 = sadd.s32 1, %s829_s17   ;;  %s1126_s12 = smov %s813_s13 }
 0x16d   : > { %p17_p1 = scmp.ge.s32.totalorder %s20_s17, 5   ;;  %s1127_s13 = smov %s817_s14 }
 0x16e   : > { %s1128_s14 = smov %s973_s21  ;;  %s1129_s15 = smov %s825_s16 }
 0x16f   : > { %s1130_s16 = smov %s1132_s30  ;;  %19 = sbr.rel (!%p17_p1) target bundleno = 7 (0x7), region = 94 }
 0x176   :  { %413 = vsyncpa [#allocation4], 1 }
 0x177   :  { %415 = vsyncpa [#allocation4 + $0x1], 1 }
 0x178   :  { %416 = vsyncpa [#allocation7], 1 }
 0x179   :  { %418 = vsyncpa [#allocation7 + $0x1], 1 }
 0x17a   :  { %419 = vsyncpa [#allocation5], 1 }
 0x17b   :  { %421 = vsyncpa [#allocation5 + $0x1], 1 }

</bundles_post_ra>
